<compile_context>
chip_gen: v6e
topology: v6e:2x2x1
jax: 0.10.0
libtpu: 0.0.40
codegen_flags: <defaults>
</compile_context>

<pallas_src>
import math

import jax
import jax.numpy as jnp
import numpy as np
from jax.experimental import pallas as pl
from jax.experimental.pallas import tpu as pltpu


def _round_up(n: int, m: int) -> int:
    return ((n + m - 1) // m) * m


def _cdiv(a: int, b: int) -> int:
    return -(-a // b)


def _make_cheb_kernel(beta: int, R_cut: float, R_min: float,
                      tile_rows: int, chunk: int):
    """Chebyshev-polynomial-cutoff kernel over one (tile_rows, 128) block."""
    assert tile_rows % chunk == 0
    n_chunks = tile_rows // chunk
    inv = 2.0 / (R_cut - R_min)      # precomputed at trace time: no per-elem divide

    def kernel(x_ref, o_ref):
        # Strip-mine over sublane chunks so carries stay in a handful of vregs
        # even for very large blocks (review item: avoid spill vld/vst).
        @pl.loop(0, n_chunks)
        def _(c):
            r0 = pl.multiple_of(c * chunk, chunk)
            rows = pl.ds(r0, chunk)
            x = x_ref[rows, :].astype(jnp.float32)             # (chunk, 128)
            t = (x - R_min) * inv - 1.0
            # Single vselect instead of cast + multiply (strict '<' matches ref).
            cutoff = jnp.where(x < R_cut, jnp.square(x - R_cut), 0.0)

            if beta == 1:
                # chebyshev_polynomial(1, x) == t  -> output is t * cutoff
                o_ref[0, rows, :] = (t * cutoff).astype(o_ref.dtype)
            else:
                prev2 = cutoff                 # T_0 * cutoff
                prev1 = t * cutoff             # T_1 * cutoff
                o_ref[0, rows, :] = prev2.astype(o_ref.dtype)
                o_ref[1, rows, :] = prev1.astype(o_ref.dtype)
                two_t = t + t
                for k in range(2, beta):       # unrolled at trace time (k static)
                    nxt = two_t * prev1 - prev2
                    o_ref[k, rows, :] = nxt.astype(o_ref.dtype)
                    prev2, prev1 = prev1, nxt

    return kernel


def chebyshev_polynomial_cutoff(x, *, beta: int, R_cut: float,
                                R_min: float = 1e-5, tile_rows: int = 1024,
                                order_major: bool = False):
    """Pallas TPU implementation of ChebyshevPolynomialCutoff.forward.

    x: (N, 1) float32 distances. Returns (N, beta) (or (N, 1) if beta == 1),
    matching the PyTorch module. With order_major=True it returns the
    (beta, N) layout instead, skipping the wrapper-side XLA transpose (use
    this when the consumer can take that layout directly).

    tile_rows: rows of 128 lanes per grid step (multiple of 8). Default 1024
    rows -> 131072 elements/step; at beta=8 f32 that is ~9 MiB double-buffered,
    within the scoped-VMEM defaults of v5e/v6e/v7x.
    """
    N, one = x.shape
    assert one == 1, "x is expected to be a (N, 1) column of distances"
    assert beta >= 1
    out_cols = beta if beta > 1 else 1

    rows_needed = _cdiv(N, 128)
    tr = min(tile_rows, _round_up(rows_needed, 8))
    tr = _round_up(tr, 8)
    # v7x has 2 TensorCores per chip sharing the "parallel" grid axis: once
    # there is non-trivial work, make sure the grid has >= 2 steps.
    if rows_needed > 16 and _cdiv(rows_needed, tr) < 2:
        tr = _round_up(_cdiv(rows_needed, 2), 8)
    grid = _cdiv(rows_needed, tr)
    rows_total = grid * tr
    n_total = rows_total * 128

    # In-kernel strip size (sublane aligned, divides the block).
    chunk = math.gcd(tr, 64)

    # Sublane-dense repack: flatten and pad up to the block multiple. Padded
    # lanes produce finite garbage rows (t ~ -1) that are sliced off below and
    # never reduced over, so there is no NaN hazard.
    xf = x.reshape(-1)
    if n_total != N:
        xf = jnp.pad(xf, (0, n_total - N))
    x2d = xf.reshape(rows_total, 128)

    out3d = pl.pallas_call(
        _make_cheb_kernel(beta, float(R_cut), float(R_min), tr, chunk),
        out_shape=jax.ShapeDtypeStruct((out_cols, rows_total, 128), x.dtype),
        grid=(grid,),
        in_specs=[pl.BlockSpec((tr, 128), lambda i: (i, 0))],
        out_specs=pl.BlockSpec((out_cols, tr, 128), lambda i: (0, i, 0)),
        compiler_params=pltpu.CompilerParams(
            dimension_semantics=("parallel",)),
    )(x2d)

    # (out_cols, rows_total, 128) -> (out_cols, n_total) is a free contiguous
    # reshape; the slice trims padding.
    out = out3d.reshape(out_cols, n_total)[:, :N]
    if order_major:
        return out       # (beta, N): no standalone transpose pass
    return out.T         # (N, beta): matches the PyTorch module exactly


def _reference(x, beta, R_cut, R_min):
    """Pure-numpy (float32) reference mirroring the PyTorch module exactly."""
    x = np.asarray(x, dtype=np.float32)
    t = 2.0 * (x - R_min) / (R_cut - R_min) - 1.0
    t = t.astype(np.float32)
    if beta == 1:
        poly = t
    else:
        vals = [np.ones_like(t), t]
        for _ in range(2, beta):
            vals.append((2.0 * t * vals[-1] - vals[-2]).astype(np.float32))
        poly = np.concatenate(vals, axis=1)
    poly = poly * np.square(x - R_cut)
    poly = poly * (x < R_cut).astype(np.float32)
    return poly.astype(np.float32)


if __name__ == "__main__":
    # Module hyperparameters (this module has no learnable weights).
    beta, R_cut, R_min = 8, 5.0, 1e-5

    key = jax.random.PRNGKey(0)
    k_small, k_big = jax.random.split(key)

    # Case 1: N not a multiple of 128 -> exercises the padding path (grid=1).
    x_small = jax.random.uniform(k_small, (1000, 1), dtype=jnp.float32,
                                 minval=0.0, maxval=6.0)
    out = jax.block_until_ready(
        chebyshev_polynomial_cutoff(x_small, beta=beta, R_cut=R_cut, R_min=R_min))
    ref = _reference(np.asarray(x_small), beta, R_cut, R_min)
    assert out.shape == ref.shape, (out.shape, ref.shape)
    # Fused 1/(R_cut-R_min) multiply + FMA-less accumulation round slightly
    # differently than the numpy reference (~4e-5 relative at beta=8).
    np.testing.assert_allclose(np.asarray(out), ref, rtol=2e-4, atol=1e-4)

    # Case 2: larger N -> exercises the multi-step grid (both TCs on v7x) and
    # the in-kernel strip-mined chunk loop.
    x_big = jax.random.uniform(k_big, (9000, 1), dtype=jnp.float32,
                               minval=0.0, maxval=6.0)
    out_big = jax.block_until_ready(
        chebyshev_polynomial_cutoff(x_big, beta=beta, R_cut=R_cut, R_min=R_min))
    ref_big = _reference(np.asarray(x_big), beta, R_cut, R_min)
    assert out_big.shape == ref_big.shape, (out_big.shape, ref_big.shape)
    np.testing.assert_allclose(np.asarray(out_big), ref_big, rtol=2e-4, atol=1e-4)

    # Case 3: beta == 1 path.
    out1 = jax.block_until_ready(
        chebyshev_polynomial_cutoff(x_small, beta=1, R_cut=R_cut, R_min=R_min))
    ref1 = _reference(np.asarray(x_small), 1, R_cut, R_min)
    np.testing.assert_allclose(np.asarray(out1), ref1, rtol=2e-4, atol=1e-4)

    # Case 4: order-major layout (transpose-free) agrees with the default.
    out_om = jax.block_until_ready(
        chebyshev_polynomial_cutoff(x_small, beta=beta, R_cut=R_cut, R_min=R_min,
                                    order_major=True))
    np.testing.assert_allclose(np.asarray(out_om.T), np.asarray(out), rtol=0, atol=0)

    print("KERNEL_OK")
</pallas_src>

<mosaic_0001>
module attributes {stable_mosaic.version = 11 : i64} {
  func.func @kernel(%arg0: i32, %arg1: memref<8x128xf32, #tpu.memory_space<vmem>>, %arg2: memref<8x8x128xf32, #tpu.memory_space<vmem>>) attributes {dimension_semantics = [#tpu.dimension_semantics<parallel>], iteration_bounds = array<i64: 1>, scalar_prefetch = 0 : i64, scratch_operands = 0 : i64, tpu.core_type = #tpu.core_type<tc>, window_params = [{transform_indices = @transform_0, window_bounds = array<i64: 8, 128>}, {transform_indices = @transform_1, window_bounds = array<i64: 8, 8, 128>}]} {
    %c0_i32 = arith.constant 0 : i32
    %c1_i32 = arith.constant 1 : i32
    %0 = arith.muli %c0_i32, %c1_i32 : i32
    %c0_i32_0 = arith.constant 0 : i32
    %1 = arith.addi %c0_i32_0, %0 : i32
    %c8_i32 = arith.constant 8 : i32
    %2 = arith.muli %1, %c8_i32 : i32
    %3 = tpu.assume_multiple %2, 8 : i32
    %4 = arith.index_cast %3 : i32 to index
    %c0 = arith.constant 0 : index
    %5 = vector.load %arg1[%4, %c0] : memref<8x128xf32, #tpu.memory_space<vmem>>, vector<8x128xf32>
    %cst = arith.constant 9.99999974E-6 : f32
    %6 = vector.broadcast %cst : f32 to vector<8x128xf32>
    %7 = arith.subf %5, %6 : vector<8x128xf32>
    %cst_1 = arith.constant 0.400000811 : f32
    %8 = vector.broadcast %cst_1 : f32 to vector<8x128xf32>
    %9 = arith.mulf %7, %8 : vector<8x128xf32>
    %cst_2 = arith.constant 1.000000e+00 : f32
    %10 = vector.broadcast %cst_2 : f32 to vector<8x128xf32>
    %11 = arith.subf %9, %10 : vector<8x128xf32>
    %cst_3 = arith.constant 5.000000e+00 : f32
    %12 = vector.broadcast %cst_3 : f32 to vector<8x128xf32>
    %13 = arith.cmpf olt, %5, %12 : vector<8x128xf32>
    %cst_4 = arith.constant 5.000000e+00 : f32
    %14 = vector.broadcast %cst_4 : f32 to vector<8x128xf32>
    %15 = arith.subf %5, %14 : vector<8x128xf32>
    %16 = arith.mulf %15, %15 : vector<8x128xf32>
    %cst_5 = arith.constant 0.000000e+00 : f32
    %17 = vector.broadcast %cst_5 : f32 to vector<8x128xf32>
    %18 = arith.select %13, %16, %17 : vector<8x128xi1>, vector<8x128xf32>
    %19 = arith.mulf %11, %18 : vector<8x128xf32>
    %c0_6 = arith.constant 0 : index
    %20 = arith.index_cast %3 : i32 to index
    %c0_7 = arith.constant 0 : index
    %21 = vector.load %arg2[%c0_6, %20, %c0_7] : memref<8x8x128xf32, #tpu.memory_space<vmem>>, vector<1x8x128xf32>
    %22 = vector.shape_cast %21 : vector<1x8x128xf32> to vector<8x128xf32>
    %23 = vector.shape_cast %18 : vector<8x128xf32> to vector<1x8x128xf32>
    tpu.vector_store %arg2[%c0_6, %20, %c0_7], %23 {strides = array<i32>} : memref<8x8x128xf32, #tpu.memory_space<vmem>>, vector<1x8x128xf32>,
    %c1 = arith.constant 1 : index
    %24 = arith.index_cast %3 : i32 to index
    %c0_8 = arith.constant 0 : index
    %25 = vector.load %arg2[%c1, %24, %c0_8] : memref<8x8x128xf32, #tpu.memory_space<vmem>>, vector<1x8x128xf32>
    %26 = vector.shape_cast %25 : vector<1x8x128xf32> to vector<8x128xf32>
    %27 = vector.shape_cast %19 : vector<8x128xf32> to vector<1x8x128xf32>
    tpu.vector_store %arg2[%c1, %24, %c0_8], %27 {strides = array<i32>} : memref<8x8x128xf32, #tpu.memory_space<vmem>>, vector<1x8x128xf32>,
    %28 = arith.addf %11, %11 : vector<8x128xf32>
    %29 = arith.mulf %28, %19 : vector<8x128xf32>
    %30 = arith.subf %29, %18 : vector<8x128xf32>
    %c2 = arith.constant 2 : index
    %31 = arith.index_cast %3 : i32 to index
    %c0_9 = arith.constant 0 : index
    %32 = vector.load %arg2[%c2, %31, %c0_9] : memref<8x8x128xf32, #tpu.memory_space<vmem>>, vector<1x8x128xf32>
    %33 = vector.shape_cast %32 : vector<1x8x128xf32> to vector<8x128xf32>
    %34 = vector.shape_cast %30 : vector<8x128xf32> to vector<1x8x128xf32>
    tpu.vector_store %arg2[%c2, %31, %c0_9], %34 {strides = array<i32>} : memref<8x8x128xf32, #tpu.memory_space<vmem>>, vector<1x8x128xf32>,
    %35 = arith.mulf %28, %30 : vector<8x128xf32>
    %36 = arith.subf %35, %19 : vector<8x128xf32>
    %c3 = arith.constant 3 : index
    %37 = arith.index_cast %3 : i32 to index
    %c0_10 = arith.constant 0 : index
    %38 = vector.load %arg2[%c3, %37, %c0_10] : memref<8x8x128xf32, #tpu.memory_space<vmem>>, vector<1x8x128xf32>
    %39 = vector.shape_cast %38 : vector<1x8x128xf32> to vector<8x128xf32>
    %40 = vector.shape_cast %36 : vector<8x128xf32> to vector<1x8x128xf32>
    tpu.vector_store %arg2[%c3, %37, %c0_10], %40 {strides = array<i32>} : memref<8x8x128xf32, #tpu.memory_space<vmem>>, vector<1x8x128xf32>,
    %41 = arith.mulf %28, %36 : vector<8x128xf32>
    %42 = arith.subf %41, %30 : vector<8x128xf32>
    %c4 = arith.constant 4 : index
    %43 = arith.index_cast %3 : i32 to index
    %c0_11 = arith.constant 0 : index
    %44 = vector.load %arg2[%c4, %43, %c0_11] : memref<8x8x128xf32, #tpu.memory_space<vmem>>, vector<1x8x128xf32>
    %45 = vector.shape_cast %44 : vector<1x8x128xf32> to vector<8x128xf32>
    %46 = vector.shape_cast %42 : vector<8x128xf32> to vector<1x8x128xf32>
    tpu.vector_store %arg2[%c4, %43, %c0_11], %46 {strides = array<i32>} : memref<8x8x128xf32, #tpu.memory_space<vmem>>, vector<1x8x128xf32>,
    %47 = arith.mulf %28, %42 : vector<8x128xf32>
    %48 = arith.subf %47, %36 : vector<8x128xf32>
    %c5 = arith.constant 5 : index
    %49 = arith.index_cast %3 : i32 to index
    %c0_12 = arith.constant 0 : index
    %50 = vector.load %arg2[%c5, %49, %c0_12] : memref<8x8x128xf32, #tpu.memory_space<vmem>>, vector<1x8x128xf32>
    %51 = vector.shape_cast %50 : vector<1x8x128xf32> to vector<8x128xf32>
    %52 = vector.shape_cast %48 : vector<8x128xf32> to vector<1x8x128xf32>
    tpu.vector_store %arg2[%c5, %49, %c0_12], %52 {strides = array<i32>} : memref<8x8x128xf32, #tpu.memory_space<vmem>>, vector<1x8x128xf32>,
    %53 = arith.mulf %28, %48 : vector<8x128xf32>
    %54 = arith.subf %53, %42 : vector<8x128xf32>
    %c6 = arith.constant 6 : index
    %55 = arith.index_cast %3 : i32 to index
    %c0_13 = arith.constant 0 : index
    %56 = vector.load %arg2[%c6, %55, %c0_13] : memref<8x8x128xf32, #tpu.memory_space<vmem>>, vector<1x8x128xf32>
    %57 = vector.shape_cast %56 : vector<1x8x128xf32> to vector<8x128xf32>
    %58 = vector.shape_cast %54 : vector<8x128xf32> to vector<1x8x128xf32>
    tpu.vector_store %arg2[%c6, %55, %c0_13], %58 {strides = array<i32>} : memref<8x8x128xf32, #tpu.memory_space<vmem>>, vector<1x8x128xf32>,
    %59 = arith.mulf %28, %54 : vector<8x128xf32>
    %60 = arith.subf %59, %48 : vector<8x128xf32>
    %c7 = arith.constant 7 : index
    %61 = arith.index_cast %3 : i32 to index
    %c0_14 = arith.constant 0 : index
    %62 = vector.load %arg2[%c7, %61, %c0_14] : memref<8x8x128xf32, #tpu.memory_space<vmem>>, vector<1x8x128xf32>
    %63 = vector.shape_cast %62 : vector<1x8x128xf32> to vector<8x128xf32>
    %64 = vector.shape_cast %60 : vector<8x128xf32> to vector<1x8x128xf32>
    tpu.vector_store %arg2[%c7, %61, %c0_14], %64 {strides = array<i32>} : memref<8x8x128xf32, #tpu.memory_space<vmem>>, vector<1x8x128xf32>,
    %c1_i32_15 = arith.constant 1 : i32
    return
  }
  func.func @transform_0(%arg0: i32) -> (i32, i32) {
    %c0_i32 = arith.constant 0 : i32
    %c0_i32_0 = arith.constant 0 : i32
    return %arg0, %c0_i32 : i32, i32
  }
  func.func @transform_1(%arg0: i32) -> (i32, i32, i32) {
    %c0_i32 = arith.constant 0 : i32
    %c0_i32_0 = arith.constant 0 : i32
    %c0_i32_1 = arith.constant 0 : i32
    return %c0_i32, %arg0, %c0_i32_0 : i32, i32, i32
  }
}

</mosaic_0001>

<bundles_post_ra>
// kernel: tpu_custom_call.1
= control target key start
LH: loop header
LB: loop body
LE: loop exit
PB: predicated region body
PF: predicated region fallthrough
CT: control target
= control target key end

     0   :  { %6 = vsyncpa [#allocation3], 0  ;;  %s160_s0 = inlined_call_operand.hbm [shape: f32[8,128], index: 0, kind: input, shape index: {}]   ;;  %s161_s1 = inlined_call_operand.hbm [shape: f32[8,8,128], index: 1, kind: output, shape index: {}]  }
   0x1   :  { %7 = vsyncpa [#allocation4], 0  ;;  %s140_s6 = smov [#allocation2]  }
   0x2   :  { %s14_s7 = sshll.u32 %s140_s6, 4  ;;  %s15_s7 = int_to_ptr.vmem [resolvable:$true] %s14_s7 }
   0x3   :  { %s104_s8 = scalar_lea.vmem %s15_s7, 128  ;;  %p109_p1 = scmp.lt.s32.totalorder %s15_s7, %s15_s7 }
   0x4   :  { %p105_p0 = scmp.ne.s32.totalorder %s15_s7, %s104_s8  ;;  %p110_p2 = scmp.lt.s32.totalorder %s104_s8, %s104_s8 }
   0x6   :  { %p111_p3 = por %p110_p2, %p109_p1 }
   0x8   :  { %p112_p4 = pnand %p111_p3, %p105_p0 }
   0xa   :  { %115 = shalt.err (!%p112_p4)
}
   0xb   :  { %17 = dma.hbm_to_vmem [thread:$0]  %s160_s0, 128, %s15_s7, [#allocation3]  }
   0xc   :  { %136 = dma.done.wait [#allocation3], 128  }
   0xd   :  { %137 = vsyncadd [#allocation3], 4294967168  ;;  %v21_v0 = vld [vmem:[#allocation2] sm:$0xff]  ;;  %s141_s0 = smov [#allocation5]  }
   0xe   :  { %v91_v1 = vadd.f32 -5.0, %v21_v0  ;;  %v89_v2 = vadd.f32 -1e-05, %v21_v0  ;;  %vm25_vm0 = vcmp.lt.f32.partialorder %v21_v0, 5.0  ;;  %s70_s11 = sshll.u32 %s141_s0, 4  ;;  %s71_s11 = int_to_ptr.vmem [resolvable:$true] %s70_s11 }
   0xf   :  { %s116_s12 = scalar_lea.vmem %s71_s11, 1024  ;;  %p121_p6 = scmp.lt.s32.totalorder %s71_s11, %s71_s11 }
  0x10   :  { %v27_v3 = vmul.f32 %v91_v1, %v91_v1  ;;  %v23_v4 = vmul.f32 0.4000008, %v89_v2  ;;  %p117_p5 = scmp.ne.s32.totalorder %s71_s11, %s116_s12  ;;  %p122_p7 = scmp.lt.s32.totalorder %s116_s12, %s116_s12 }
  0x12   :  { %v28_v5 = vsel %vm25_vm0, %v27_v3, 0.0  ;;  %v90_v6 = vadd.f32 -1.0, %v23_v4  ;;  %p123_p8 = por %p122_p7, %p121_p6 }
  0x13   :  { %30 = vst [vmem:[#allocation5] sm:$0xff] %v28_v5 }
  0x14   :  { %v29_v7 = vmul.f32 %v90_v6, %v28_v5  ;;  %v34_v8 = vadd.f32 %v90_v6, %v90_v6  ;;  %p124_p9 = pnand %p123_p8, %p117_p5 }
  0x16   :  { %33 = vst [vmem:[#allocation5 + $0x8] sm:$0xff] %v29_v7  ;;  %v35_v9 = vmul.f32 %v34_v8, %v29_v7 }
  0x18   :  { %v36_v10 = vsub.f32 %v35_v9, %v28_v5 }
  0x1a   :  { %39 = vst [vmem:[#allocation5 + $0x10] sm:$0xff] %v36_v10  ;;  %v40_v11 = vmul.f32 %v36_v10, %v34_v8 }
  0x1c   :  { %v41_v12 = vsub.f32 %v40_v11, %v29_v7 }
  0x1e   :  { %44 = vst [vmem:[#allocation5 + $0x18] sm:$0xff] %v41_v12  ;;  %v45_v13 = vmul.f32 %v41_v12, %v34_v8 }
  0x20   :  { %v46_v14 = vsub.f32 %v45_v13, %v36_v10 }
  0x22   :  { %49 = vst [vmem:[#allocation5 + $0x20] sm:$0xff] %v46_v14  ;;  %v50_v15 = vmul.f32 %v46_v14, %v34_v8 }
  0x24   :  { %v51_v16 = vsub.f32 %v50_v15, %v41_v12 }
  0x26   :  { %54 = vst [vmem:[#allocation5 + $0x28] sm:$0xff] %v51_v16  ;;  %v55_v17 = vmul.f32 %v51_v16, %v34_v8 }
  0x28   :  { %v56_v18 = vsub.f32 %v55_v17, %v46_v14 }
  0x2a   :  { %59 = vst [vmem:[#allocation5 + $0x30] sm:$0xff] %v56_v18  ;;  %v60_v19 = vmul.f32 %v56_v18, %v34_v8 }
  0x2c   :  { %v61_v20 = vsub.f32 %v60_v19, %v51_v16 }
  0x2e   :  { %64 = vst [vmem:[#allocation5 + $0x38] sm:$0xff] %v61_v20 }
  0x2f   :  { %127 = shalt.err (!%p124_p9)
}
  0x30   :  { %s142_s13 = smov 128   ;;  %s143_s14 = smov 8  }
  0x31   :  { %76 = dma.vmem_to_hbm [thread:$0]  %s71_s11, 1024, %s161_s1, [#allocation4], %s142_s13, %s142_s13, %s143_s14  }
  0x32   :  { %138 = dma.done.wait [#allocation4], 1024  }
  0x33   :  { %139 = vsyncadd [#allocation4], 4294966272 }
  0x34   :  { %80 = vsyncpa [#allocation3], 1 }
  0x35   :  { %81 = vsyncpa [#allocation4], 1 }

</bundles_post_ra>
